<compile_context>
chip_gen: v6e
topology: v6e:2x2x1
jax: 0.10.0
libtpu: 0.0.40
codegen_flags: <defaults>
</compile_context>

<pallas_src>
import functools

import jax
import jax.numpy as jnp
from jax.experimental import pallas as pl
from jax.experimental.pallas import tpu as pltpu

# TODO(synk): the generic `sublayer` nn.Module has no Pallas equivalent; its
# output is provided as a precomputed input tensor to the fused add+norm kernel.
# TODO(synk): for d_model < 128 the output is not lane-dense (masked vst);
# production users should pack 128/d_model rows per lane group or keep
# d_model a multiple of 128.


def _addnorm_kernel(res_ref, sub_ref, gamma_ref, beta_ref, o_ref, *, eps, d_model):
    # Residual add, computed in f32 regardless of I/O dtype.
    x = res_ref[...].astype(jnp.float32) + sub_ref[...].astype(jnp.float32)

    # Two-pass moments over the lane axis: mean, then variance of (x - mean).
    # xc is reused for the normalized output, so this costs the same number of
    # elementwise passes as the single-pass (s1, s2) formulation but avoids
    # catastrophic cancellation.
    mean = jnp.sum(x, axis=-1, keepdims=True) * (1.0 / d_model)
    xc = x - mean
    # torch.std default is UNBIASED (correction = 1): divide by (d - 1).
    var = jnp.sum(xc * xc, axis=-1, keepdims=True) * (1.0 / (d_model - 1))
    std = jnp.sqrt(var)

    # Exact reciprocal of the per-row scalar (a (rows, 1) column -> negligible
    # cost), then a broadcast multiply on the VALU.  approx=True was outside
    # the required tolerance.
    inv = 1.0 / (std + eps)
    out = xc * inv
    # TODO(synk): on v6e/v7x with bf16 I/O this affine tail could run in packed
    # bf16 to halve VALU work; kept in f32 here for accuracy/portability (v5e
    # has no bf16 VALU).
    out = gamma_ref[...] * out + beta_ref[...]
    o_ref[...] = out.astype(o_ref.dtype)


def _vmem_capacity_bytes():
    """Best-effort physical VMEM query; conservative v7x fallback (64 MiB)."""
    try:
        return int(pltpu.get_tpu_info().vmem_capacity_bytes)
    except Exception:
        return 64 * 1024 * 1024


def _pick_block_rows(n_rows, d_model, in_itemsize, out_itemsize, *,
                     target_rows, vmem_live_budget, min_grid_steps=8):
    """Row-tile size: large (DMA-efficient), 16-aligned, VMEM- and grid-aware.

    Live footprint per row:
      * double-buffered pipeline tiles: (2 inputs + 1 output) x 2 buffers at
        their actual dtypes,
      * ~3 block-sized f32 in-kernel temporaries (x / xc / out).
    The grid is kept >= min_grid_steps (when rows allow) so megacore sharding
    and DMA/compute overlap are not lost to a single-step grid.
    """
    pipeline_bytes_per_row = (2 * in_itemsize + out_itemsize) * 2 * d_model
    interm_bytes_per_row = 3 * 4 * d_model
    per_row = pipeline_bytes_per_row + interm_bytes_per_row

    max_rows = max(16, vmem_live_budget // per_row)
    br = min(target_rows, max_rows)
    br = max(16, (br // 16) * 16)  # multiple of 16: sublane-aligned even for bf16

    rows_needed = ((n_rows + 15) // 16) * 16
    steps_cap = -(-n_rows // min_grid_steps)            # cdiv(n_rows, steps)
    steps_cap = max(16, ((steps_cap + 15) // 16) * 16)  # 16-align, floor 16

    return max(16, min(br, steps_cap, rows_needed))


def add_norm(residual, sublayer_out, gamma, beta, *, eps=1e-6, block_rows=None):
    """LayerNorm(sublayer_out + residual) over the last axis (torch AddNorm)."""
    assert residual.shape == sublayer_out.shape
    orig_shape = residual.shape
    d_model = orig_shape[-1]
    assert d_model > 1, "unbiased std (divisor d-1) requires d_model > 1"

    res2d = residual.reshape(-1, d_model)
    sub2d = sublayer_out.reshape(-1, d_model)
    n_rows = res2d.shape[0]

    in_itemsize = max(jnp.dtype(res2d.dtype).itemsize,
                      jnp.dtype(sub2d.dtype).itemsize)
    out_itemsize = jnp.dtype(residual.dtype).itemsize

    # Generation-aware VMEM sizing (v5e/v6e: 128 MiB, v7x: 64 MiB per TC).
    vmem_cap = _vmem_capacity_bytes()
    vmem_limit = min(int(vmem_cap * 3 // 4), 112 * 1024 * 1024)
    vmem_live_budget = vmem_limit // 2
    target_rows = 1024 if vmem_cap >= 96 * 1024 * 1024 else 512

    if block_rows is None:
        block_rows = _pick_block_rows(
            n_rows, d_model, in_itemsize, out_itemsize,
            target_rows=target_rows, vmem_live_budget=vmem_live_budget)

    # Cast affine params to f32 once outside the grid; constant index_map keeps
    # them VMEM-resident across the whole grid.
    gamma2d = gamma.reshape(1, d_model).astype(jnp.float32)
    beta2d = beta.reshape(1, d_model).astype(jnp.float32)

    grid = (pl.cdiv(n_rows, block_rows),)  # no jnp.pad: last block is masked
    kernel = functools.partial(_addnorm_kernel, eps=float(eps), d_model=d_model)

    # Advisory cost so XLA schedules the surrounding graph around this call.
    bytes_accessed = (n_rows * d_model * (2 * in_itemsize + out_itemsize)
                      + 2 * d_model * 4)
    cost = pl.CostEstimate(
        flops=9 * n_rows * d_model,
        transcendentals=2 * n_rows,   # sqrt + reciprocal per row
        bytes_accessed=bytes_accessed,
    )

    out = pl.pallas_call(
        kernel,
        out_shape=jax.ShapeDtypeStruct((n_rows, d_model), residual.dtype),
        grid_spec=pltpu.PrefetchScalarGridSpec(
            num_scalar_prefetch=0,
            grid=grid,
            in_specs=[
                pl.BlockSpec((block_rows, d_model), lambda i: (i, 0)),
                pl.BlockSpec((block_rows, d_model), lambda i: (i, 0)),
                pl.BlockSpec((1, d_model), lambda i: (0, 0)),
                pl.BlockSpec((1, d_model), lambda i: (0, 0)),
            ],
            out_specs=pl.BlockSpec((block_rows, d_model), lambda i: (i, 0)),
        ),
        compiler_params=pltpu.CompilerParams(
            dimension_semantics=("parallel",),
            vmem_limit_bytes=int(vmem_limit),
        ),
        cost_estimate=cost,
    )(res2d, sub2d, gamma2d, beta2d)

    return out.reshape(orig_shape)


def _reference_add_norm(residual, sublayer_out, gamma, beta, eps=1e-6):
    x = (residual + sublayer_out).astype(jnp.float32)
    mean = jnp.mean(x, axis=-1, keepdims=True)
    std = jnp.std(x, axis=-1, keepdims=True, ddof=1)  # torch unbiased std
    out = (x - mean) / (std + eps)
    return gamma * out + beta


if __name__ == "__main__":
    key = jax.random.PRNGKey(0)
    k_res, k_sub, k_res2, k_sub2 = jax.random.split(key, 4)

    # Case 1: small shapes consistent with the module (batch, seq, d_model).
    batch, seq, d_model = 2, 8, 32
    residual = jax.random.normal(k_res, (batch, seq, d_model), dtype=jnp.float32)
    sublayer_out = jax.random.normal(k_sub, (batch, seq, d_model), dtype=jnp.float32)
    # LayerNorm.__init__: gamma = ones, beta = zeros.
    gamma = jnp.ones((d_model,), dtype=jnp.float32)
    beta = jnp.zeros((d_model,), dtype=jnp.float32)

    out = jax.block_until_ready(add_norm(residual, sublayer_out, gamma, beta))
    ref = _reference_add_norm(residual, sublayer_out, gamma, beta)
    assert out.shape == (batch, seq, d_model)
    assert jnp.allclose(out, ref, atol=2e-3, rtol=2e-3), float(
        jnp.max(jnp.abs(out - ref)))

    # Case 2: lane-dense d_model (128) with a ragged row count (n_rows = 15),
    # exercising the cdiv grid + masked last block path (no wrapper padding).
    b2, s2, d2 = 3, 5, 128
    residual2 = jax.random.normal(k_res2, (b2, s2, d2), dtype=jnp.float32)
    sublayer2 = jax.random.normal(k_sub2, (b2, s2, d2), dtype=jnp.float32)
    gamma2 = jnp.full((d2,), 1.5, dtype=jnp.float32)
    beta2 = jnp.full((d2,), 0.25, dtype=jnp.float32)

    out2 = jax.block_until_ready(add_norm(residual2, sublayer2, gamma2, beta2))
    ref2 = _reference_add_norm(residual2, sublayer2, gamma2, beta2)
    assert out2.shape == (b2, s2, d2)
    assert jnp.allclose(out2, ref2, atol=2e-3, rtol=2e-3), float(
        jnp.max(jnp.abs(out2 - ref2)))

    print("KERNEL_OK")
</pallas_src>

<mosaic_0001>
module attributes {stable_mosaic.version = 11 : i64} {
  func.func @_addnorm_kernel(%arg0: i32, %arg1: memref<16x32xf32, #tpu.memory_space<vmem>>, %arg2: memref<16x32xf32, #tpu.memory_space<vmem>>, %arg3: memref<1x32xf32, #tpu.memory_space<vmem>>, %arg4: memref<1x32xf32, #tpu.memory_space<vmem>>, %arg5: memref<16x32xf32, #tpu.memory_space<vmem>>) attributes {dimension_semantics = [#tpu.dimension_semantics<parallel>], iteration_bounds = array<i64: 1>, scalar_prefetch = 0 : i64, scratch_operands = 0 : i64, tpu.core_type = #tpu.core_type<tc>, window_params = [{transform_indices = @transform_0, window_bounds = array<i64: 16, 32>}, {transform_indices = @transform_1, window_bounds = array<i64: 16, 32>}, {pipeline_mode = #tpu.pipeline_mode<synchronous>, transform_indices = @transform_2, window_bounds = array<i64: 1, 32>}, {pipeline_mode = #tpu.pipeline_mode<synchronous>, transform_indices = @transform_3, window_bounds = array<i64: 1, 32>}, {transform_indices = @transform_4, window_bounds = array<i64: 16, 32>}]} {
    %c0 = arith.constant 0 : index
    %c0_0 = arith.constant 0 : index
    %0 = vector.load %arg1[%c0, %c0_0] : memref<16x32xf32, #tpu.memory_space<vmem>>, vector<16x32xf32>
    %c0_1 = arith.constant 0 : index
    %c0_2 = arith.constant 0 : index
    %1 = vector.load %arg2[%c0_1, %c0_2] : memref<16x32xf32, #tpu.memory_space<vmem>>, vector<16x32xf32>
    %2 = arith.addf %0, %1 : vector<16x32xf32>
    %cst = arith.constant dense<0.000000e+00> : vector<16xf32>
    %3 = vector.multi_reduction <add>, %2, %cst [1] : vector<16x32xf32> to vector<16xf32>
    %4 = vector.shape_cast %3 : vector<16xf32> to vector<16x1xf32>
    %cst_3 = arith.constant 3.125000e-02 : f32
    %5 = vector.broadcast %cst_3 : f32 to vector<16x1xf32>
    %6 = arith.mulf %4, %5 : vector<16x1xf32>
    %7 = vector.broadcast %6 : vector<16x1xf32> to vector<16x32xf32>
    %8 = arith.subf %2, %7 : vector<16x32xf32>
    %9 = arith.mulf %8, %8 : vector<16x32xf32>
    %cst_4 = arith.constant dense<0.000000e+00> : vector<16xf32>
    %10 = vector.multi_reduction <add>, %9, %cst_4 [1] : vector<16x32xf32> to vector<16xf32>
    %11 = vector.shape_cast %10 : vector<16xf32> to vector<16x1xf32>
    %cst_5 = arith.constant 0.0322580636 : f32
    %12 = vector.broadcast %cst_5 : f32 to vector<16x1xf32>
    %13 = arith.mulf %11, %12 : vector<16x1xf32>
    %14 = math.sqrt %13 : vector<16x1xf32>
    %cst_6 = arith.constant 9.99999997E-7 : f32
    %15 = vector.broadcast %cst_6 : f32 to vector<16x1xf32>
    %16 = arith.addf %14, %15 : vector<16x1xf32>
    %cst_7 = arith.constant 1.000000e+00 : f32
    %17 = vector.broadcast %cst_7 : f32 to vector<16x1xf32>
    %18 = arith.divf %17, %16 : vector<16x1xf32>
    %19 = vector.broadcast %18 : vector<16x1xf32> to vector<16x32xf32>
    %20 = arith.mulf %8, %19 : vector<16x32xf32>
    %c0_8 = arith.constant 0 : index
    %c0_9 = arith.constant 0 : index
    %21 = vector.load %arg3[%c0_8, %c0_9] : memref<1x32xf32, #tpu.memory_space<vmem>>, vector<1x32xf32>
    %22 = vector.broadcast %21 : vector<1x32xf32> to vector<16x32xf32>
    %23 = arith.mulf %22, %20 : vector<16x32xf32>
    %c0_10 = arith.constant 0 : index
    %c0_11 = arith.constant 0 : index
    %24 = vector.load %arg4[%c0_10, %c0_11] : memref<1x32xf32, #tpu.memory_space<vmem>>, vector<1x32xf32>
    %25 = vector.broadcast %24 : vector<1x32xf32> to vector<16x32xf32>
    %26 = arith.addf %23, %25 : vector<16x32xf32>
    %c0_12 = arith.constant 0 : index
    %c0_13 = arith.constant 0 : index
    %27 = vector.load %arg5[%c0_12, %c0_13] : memref<16x32xf32, #tpu.memory_space<vmem>>, vector<16x32xf32>
    tpu.vector_store %arg5[%c0_12, %c0_13], %26 {strides = array<i32>} : memref<16x32xf32, #tpu.memory_space<vmem>>, vector<16x32xf32>,
    return
  }
  func.func @transform_0(%arg0: i32) -> (i32, i32) {
    %c0_i32 = arith.constant 0 : i32
    %c0_i32_0 = arith.constant 0 : i32
    return %arg0, %c0_i32 : i32, i32
  }
  func.func @transform_1(%arg0: i32) -> (i32, i32) {
    %c0_i32 = arith.constant 0 : i32
    %c0_i32_0 = arith.constant 0 : i32
    return %arg0, %c0_i32 : i32, i32
  }
  func.func @transform_2(%arg0: i32) -> (i32, i32) {
    %c0_i32 = arith.constant 0 : i32
    %c0_i32_0 = arith.constant 0 : i32
    %c0_i32_1 = arith.constant 0 : i32
    return %c0_i32, %c0_i32_0 : i32, i32
  }
  func.func @transform_3(%arg0: i32) -> (i32, i32) {
    %c0_i32 = arith.constant 0 : i32
    %c0_i32_0 = arith.constant 0 : i32
    %c0_i32_1 = arith.constant 0 : i32
    return %c0_i32, %c0_i32_0 : i32, i32
  }
  func.func @transform_4(%arg0: i32) -> (i32, i32) {
    %c0_i32 = arith.constant 0 : i32
    %c0_i32_0 = arith.constant 0 : i32
    return %arg0, %c0_i32 : i32, i32
  }
}

</mosaic_0001>

<bundles_post_ra>
// kernel: tpu_custom_call.1
= control target key start
LH: loop header
LB: loop body
LE: loop exit
PB: predicated region body
PF: predicated region fallthrough
CT: control target
= control target key end

     0   :  { %9 = vsyncpa [#allocation3], 0  ;;  %s274_s0 = inlined_call_operand.hbm [shape: f32[16,32], index: 0, kind: input, shape index: {}]   ;;  %s275_s1 = inlined_call_operand.hbm [shape: f32[16,32], index: 1, kind: input, shape index: {}]   ;;  %s276_s2 = inlined_call_operand.vmem [shape: f32[1,32], index: 2, kind: input, shape index: {}]   ;;  %s277_s3 = inlined_call_operand.vmem [shape: f32[1,32], index: 3, kind: input, shape index: {}]   ;;  %s278_s4 = inlined_call_operand.hbm [shape: f32[16,32], index: 4, kind: output, shape index: {}]  }
   0x1   :  { %10 = vsyncpa [#allocation6], 0 }
   0x2   :  { %11 = vsyncpa [#allocation4], 0  ;;  %s214_s15 = smov [#allocation2]  }
   0x3   :  { %s17_s16 = sshll.u32 %s214_s15, 4  ;;  %s18_s16 = int_to_ptr.vmem [resolvable:$true] %s17_s16 }
   0x4   :  { %s156_s17 = scalar_lea.vmem %s18_s16, 256  ;;  %p161_p1 = scmp.lt.s32.totalorder %s18_s16, %s18_s16 }
   0x5   :  { %p157_p0 = scmp.ne.s32.totalorder %s18_s16, %s156_s17  ;;  %p162_p2 = scmp.lt.s32.totalorder %s156_s17, %s156_s17 }
   0x7   :  { %p163_p3 = por %p162_p2, %p161_p1 }
   0x9   :  { %p164_p4 = pnand %p163_p3, %p157_p0 }
   0xb   :  { %167 = shalt.err (!%p164_p4)
}
   0xc   :  { %s215_s18 = smov 128   ;;  %s216_s19 = smov 8  }
   0xd   :  { %23 = dma.hbm_to_vmem [thread:$0]  %s274_s0, 256, %s18_s16, [#allocation3], %s215_s18, %s215_s18, %s216_s19  }
   0xe   :  { %s217_s22 = smov [#allocation5]  }
   0xf   :  { %s29_s23 = sshll.u32 %s217_s22, 4  ;;  %s30_s23 = int_to_ptr.vmem [resolvable:$true] %s29_s23 }
  0x10   :  { %s176_s24 = scalar_lea.vmem %s30_s23, 256  ;;  %p181_p6 = scmp.lt.s32.totalorder %s30_s23, %s30_s23 }
  0x11   :  { %p177_p5 = scmp.ne.s32.totalorder %s30_s23, %s176_s24  ;;  %p182_p7 = scmp.lt.s32.totalorder %s176_s24, %s176_s24 }
  0x13   :  { %p183_p8 = por %p182_p7, %p181_p6 }
  0x15   :  { %p184_p9 = pnand %p183_p8, %p177_p5 }
  0x17   :  { %187 = shalt.err (!%p184_p9)
}
  0x18   :  { %35 = dma.hbm_to_vmem [thread:$0]  %s275_s1, 256, %s30_s23, [#allocation6], %s215_s18, %s215_s18, %s216_s19  }
  0x19   :  { %208 = dma.done.wait [#allocation3], 256  }
  0x1a   :  { %209 = vsyncadd [#allocation3], 4294967040 }
  0x1b   :  { %210 = dma.done.wait [#allocation6], 256  }
  0x1c   :  { %211 = vsyncadd [#allocation6], 4294967040  ;;  %v46_v0 = vld [vmem:[#allocation2] sm:$0xff]  ;;  %v48_v1 = vld [vmem:[#allocation5] sm:$0xff]  ;;  %vm52_vm0 = vcmask 261120   ;;  %s218_s29 = smov [#allocation7]  }
  0x1d   :  { %v47_v2 = vld [vmem:[#allocation2 + $0x8] sm:$0xff]  ;;  %v50_v3 = vadd.f32 %v48_v1, %v46_v0  ;;  %v49_v4 = vld [vmem:[#allocation5 + $0x8] sm:$0xff]  ;;  %v133_v35 = vld [vmem:[%s276_s2] ss:$0 sm:$0xff]  ;;  %s120_s30 = sshll.u32 %s218_s29, 4  ;;  %s121_s30 = int_to_ptr.vmem [resolvable:$true] %s120_s30 }
  0x1e   :  { %v51_v5 = vadd.f32 %v49_v4, %v47_v2  ;;  %v134_v37 = vld [vmem:[%s277_s3] ss:$0 sm:$0xff]  ;;  %s188_s5 = scalar_lea.vmem %s121_s30, 256  ;;  %p193_p11 = scmp.lt.s32.totalorder %s121_s30, %s121_s30 }
  0x1f   :  { %v53_v6 = vsel %vm52_vm0, %v50_v3, 0.0  ;;  %p189_p10 = scmp.ne.s32.totalorder %s121_s30, %s188_s5  ;;  %p194_p12 = scmp.lt.s32.totalorder %s188_s5, %s188_s5 }
  0x20   :  { %54 = vadd.xlane.f32.xlu0 %v53_v6  ;;  %v56_v7 = vsel %vm52_vm0, %v51_v5, 0.0 }
  0x21   :  { %p195_p13 = por %p194_p12, %p193_p11 }
  0x23   :  { %p196_p0 = pnand %p195_p13, %p189_p10 }
  0x24   :  { %57 = vadd.xlane.f32.xlu0 %v56_v7 }
  0xa9   :  { %v55_v8 = vpop.xlane.xlu0 %54 }
  0xaa   :  { %v59_v9 = vmul.f32 0.03125, %v55_v8 }
  0xac   :  { %v61_v10 = vsub.f32 %v50_v3, %v59_v9 }
  0xad   :  { %v58_v11 = vpop.xlane.xlu0 %57 }
  0xae   :  { %v60_v12 = vmul.f32 0.03125, %v58_v11  ;;  %v63_v13 = vmul.f32 %v61_v10, %v61_v10 }
  0xb0   :  { %v62_v14 = vsub.f32 %v51_v5, %v60_v12  ;;  %v65_v15 = vsel %vm52_vm0, %v63_v13, 0.0 }
  0xb1   :  { %66 = vadd.xlane.f32.xlu1 %v65_v15 }
  0xb2   :  { %v64_v16 = vmul.f32 %v62_v14, %v62_v14 }
  0xb4   :  { %v68_v17 = vsel %vm52_vm0, %v64_v16, 0.0 }
  0xb5   :  { %69 = vadd.xlane.f32.xlu1 %v68_v17 }
 0x13a   :  { %v67_v18 = vpop.xlane.xlu1 %66 }
 0x13b   :  { %v71_v19 = vmul.f32 0.032258064, %v67_v18 }
 0x13d   :  { %140 = vrsqrt.f32 %v71_v19  ;;  %vm75_vm1 = vcmp.eq.f32.partialorder %v71_v19, inf  ;;  %v78_v24 = vand.u32 2147483648, %v71_v19  ;;  %vm77_vm2 = vcmp.eq.f32.partialorder %v71_v19, 0.0 }
 0x13e   :  { %v70_v20 = vpop.xlane.xlu1 %69 }
 0x13f   :  { %v72_v21 = vmul.f32 0.032258064, %v70_v20 }
 0x141   :  { %142 = vrsqrt.f32 %v72_v21  ;;  %vm82_vm3 = vcmp.eq.f32.partialorder %v72_v21, inf  ;;  %v85_v30 = vand.u32 2147483648, %v72_v21  ;;  %vm84_vm4 = vcmp.eq.f32.partialorder %v72_v21, 0.0 }
 0x14a   :  { %v141_v22 = vpop.eup %140 }
 0x14b   :  { %v74_v23 = vmul.f32 %v141_v22, %v71_v19 }
 0x14d   :  { %v76_v25 = vsel %vm75_vm1, %v71_v19, %v74_v23 }
 0x14e   :  { %v143_v26 = vpop.eup %142  ;;  %v79_v27 = vsel %vm77_vm2, %v78_v24, %v76_v25 }
 0x14f   :  { %v87_v28 = vadd.f32 1e-06, %v79_v27  ;;  %v81_v29 = vmul.f32 %v143_v26, %v72_v21 }
 0x151   :  { %144 = vrcp.f32 %v87_v28  ;;  %v83_v31 = vsel %vm82_vm3, %v72_v21, %v81_v29 }
 0x152   :  { %v86_v32 = vsel %vm84_vm4, %v85_v30, %v83_v31 }
 0x153   :  { %v88_v33 = vadd.f32 1e-06, %v86_v32 }
 0x155   :  { %146 = vrcp.f32 %v88_v33 }
 0x15e   :  { %v145_v34 = vpop.eup %144 }
 0x15f   :  { %v93_v36 = vmul.f32 %v145_v34, %v61_v10 }
 0x161   :  { %v102_v38 = vmul.f32 %v133_v35, %v93_v36 }
 0x162   :  { %v147_v39 = vpop.eup %146 }
 0x163   :  { %v94_v40 = vmul.f32 %v147_v39, %v62_v14  ;;  %v111_v41 = vadd.f32 %v134_v37, %v102_v38 }
 0x165   :  { %v103_v42 = vmul.f32 %v133_v35, %v94_v40  ;;  %113 = vst.msk [vmem:[#allocation7] sm:$0xff] %vm52_vm0, %v111_v41 }
 0x167   :  { %v112_v43 = vadd.f32 %v134_v37, %v103_v42 }
 0x169   :  { %114 = vst.msk [vmem:[#allocation7 + $0x8] sm:$0xff] %vm52_vm0, %v112_v43 }
 0x16a   :  { %199 = shalt.err (!%p196_p0)
}
 0x16b   :  { %126 = dma.vmem_to_hbm [thread:$0]  %s121_s30, 256, %s278_s4, [#allocation4], %s215_s18, %s215_s18, %s216_s19  }
 0x16c   :  { %212 = dma.done.wait [#allocation4], 256  }
 0x16d   :  { %213 = vsyncadd [#allocation4], 4294967040 }
 0x16e   :  { %130 = vsyncpa [#allocation3], 1 }
 0x16f   :  { %131 = vsyncpa [#allocation6], 1 }
 0x170   :  { %132 = vsyncpa [#allocation4], 1 }

</bundles_post_ra>
